<compile_context>
chip_gen: v6e
topology: v6e:2x2x1
jax: 0.10.0
libtpu: 0.0.40
codegen_flags: <defaults>
</compile_context>

<pallas_src>
import functools
import math

import jax
import jax.numpy as jnp
from jax.experimental import pallas as pl
from jax.experimental.pallas import tpu as pltpu

_VMEM_LIMIT = 48 * 1024 * 1024  # safe on v7x (64 MiB) and v5e/v6e (128 MiB)
_NEG = -1e30                    # finite "-inf" so masked maxima stay NaN-free


def _round_up(v, m):
    return ((v + m - 1) // m) * m


def _head_expand(n_heads, n_hid, d_k):
    """(H, n_hid) 0/1 matrix mapping a per-head scalar to its d_k lanes."""
    row = jax.lax.broadcasted_iota(jnp.int32, (n_heads, n_hid), 0)
    lane = jax.lax.broadcasted_iota(jnp.int32, (n_heads, n_hid), 1)
    return jnp.logical_and(lane >= row * d_k, lane < (row + 1) * d_k).astype(
        jnp.float32)


# ---------------------------------------------------------------------------
# Kernel 1: typed linear  out[n] = act(x[n] @ W[type[n]] + b[type[n]])
# (used for the adapt layer with tanh, and the fused K/Q/V projection)
# ---------------------------------------------------------------------------
def _typed_linear_kernel(x_ref, t_ref, w_ref, b_ref, o_ref, *,
                         num_types, in_dim, apply_tanh):
    f32 = jnp.float32
    x = x_ref[...].astype(jnp.bfloat16)          # bf16 inputs, f32 accumulation
    tcol = t_ref[...]                            # (TN, 1) int32
    acc = jnp.zeros(o_ref.shape, f32)
    for t in range(num_types):
        w_t = w_ref[t * in_dim:(t + 1) * in_dim, :]          # (in_dim, out) bf16
        b_t = b_ref[t:t + 1, :]                              # (1, out) f32
        y = jnp.dot(x, w_t, preferred_element_type=f32) + b_t
        mask = (tcol == t).astype(f32)
        acc = acc + mask * y
    if apply_tanh:
        acc = jnp.tanh(acc)
    o_ref[...] = acc
    # TODO(synk): bucket/sort nodes by type (MoE-style grouped matmul) to remove
    #             the T-x redundant matmul flops; dropout after adapt is identity.


def _typed_linear(x, ntype, w2, b, *, num_types, apply_tanh, tile_n):
    n_pad, in_dim = x.shape
    out_dim = w2.shape[1]
    kern = functools.partial(_typed_linear_kernel, num_types=num_types,
                             in_dim=in_dim, apply_tanh=apply_tanh)
    return pl.pallas_call(
        kern,
        out_shape=jax.ShapeDtypeStruct((n_pad, out_dim), jnp.float32),
        grid=(n_pad // tile_n,),
        in_specs=[pl.BlockSpec((tile_n, in_dim), lambda i: (i, 0)),
                  pl.BlockSpec((tile_n, 1), lambda i: (i, 0)),
                  pl.BlockSpec(w2.shape, lambda i: (0, 0)),
                  pl.BlockSpec(b.shape, lambda i: (0, 0))],
        out_specs=pl.BlockSpec((tile_n, out_dim), lambda i: (i, 0)),
        compiler_params=pltpu.CompilerParams(
            dimension_semantics=("parallel",),
            vmem_limit_bytes=_VMEM_LIMIT),
    )(x, ntype, w2, b)


# ---------------------------------------------------------------------------
# Kernel 2 (edge pass 1): relation-specific attention scores + messages and
# per-destination (segment) max, accumulated across edge tiles.
# ---------------------------------------------------------------------------
def _edge_scores_kernel(kj_ref, qi_ref, vj_ref, et_ref, dst_ref,
                        ratt_ref, rmsg_ref, pri_ref,
                        att_ref, msg_ref, m_ref,
                        *, num_relations, n_heads, d_k):
    f32 = jnp.float32

    @pl.when(pl.program_id(0) == 0)
    def _init():
        m_ref[...] = jnp.full(m_ref.shape, _NEG, f32)

    kj = kj_ref[...]                      # (TE, D)   source keys (gathered)
    qi = qi_ref[...]                      # (TE, D)   target queries
    vj = vj_ref[...]                      # (TE, D)   source values
    et = et_ref[...]                      # (TE, 1)   edge relation type
    dst = dst_ref[...]                    # (TE, 1)   destination node id
    te = kj.shape[0]
    n_pad = m_ref.shape[1]
    # destination one-hot for this tile only (never materialized in HBM)
    oh = dst == jax.lax.broadcasted_iota(jnp.int32, (te, n_pad), 1)

    for h in range(n_heads):
        hs = slice(h * d_k, (h + 1) * d_k)
        k_h = kj[:, hs]
        q_h = qi[:, hs]
        v_h = vj[:, hs]
        att_h = jnp.zeros((te, 1), f32)
        msg_h = jnp.zeros((te, d_k), f32)
        for r in range(num_relations):
            sel = (et == r).astype(f32)                      # (TE, 1)
            base = (r * n_heads + h) * d_k
            a_rh = ratt_ref[base:base + d_k, :]              # (d_k, d_k)
            m_rh = rmsg_ref[base:base + d_k, :]
            ka = jnp.dot(k_h, a_rh, preferred_element_type=f32)
            score = jnp.sum(q_h * ka, axis=1, keepdims=True)  # (TE, 1)
            att_h = att_h + sel * score * pri_ref[r:r + 1, h:h + 1]
            msg_h = msg_h + sel * jnp.dot(v_h, m_rh, preferred_element_type=f32)
        att_ref[:, h:h + 1] = att_h
        msg_ref[:, hs] = msg_h
        # per-destination segment max (PyG-softmax stabilization)
        seg = jnp.max(jnp.where(oh, att_h, _NEG), axis=0, keepdims=True)  # (1, N)
        m_ref[h:h + 1, :] = jnp.maximum(m_ref[h:h + 1, :], seg)
    # TODO(synk): with dst-sorted edges + scalar prefetch the segment max /
    #             scatter could also tile the node axis instead of keeping
    #             (H, N) resident.


def _edge_scores(kj, qi, vj, etype, dst_col, rel_att2, rel_msg2, pri, *,
                 num_relations, n_heads, d_k, n_pad, tile_e):
    e_pad, n_hid = kj.shape
    kern = functools.partial(_edge_scores_kernel, num_relations=num_relations,
                             n_heads=n_heads, d_k=d_k)
    edge_spec = pl.BlockSpec((tile_e, n_hid), lambda i: (i, 0))
    col_spec = pl.BlockSpec((tile_e, 1), lambda i: (i, 0))
    return pl.pallas_call(
        kern,
        out_shape=(jax.ShapeDtypeStruct((e_pad, n_heads), jnp.float32),
                   jax.ShapeDtypeStruct((e_pad, n_hid), jnp.float32),
                   jax.ShapeDtypeStruct((n_heads, n_pad), jnp.float32)),
        grid=(e_pad // tile_e,),
        in_specs=[edge_spec, edge_spec, edge_spec, col_spec, col_spec,
                  pl.BlockSpec(rel_att2.shape, lambda i: (0, 0)),
                  pl.BlockSpec(rel_msg2.shape, lambda i: (0, 0)),
                  pl.BlockSpec(pri.shape, lambda i: (0, 0))],
        out_specs=(pl.BlockSpec((tile_e, n_heads), lambda i: (i, 0)),
                   pl.BlockSpec((tile_e, n_hid), lambda i: (i, 0)),
                   pl.BlockSpec((n_heads, n_pad), lambda i: (0, 0))),
        compiler_params=pltpu.CompilerParams(
            dimension_semantics=("arbitrary",),
            vmem_limit_bytes=_VMEM_LIMIT),
    )(kj, qi, vj, etype, dst_col, rel_att2, rel_msg2, pri)


# ---------------------------------------------------------------------------
# Kernel 3 (edge pass 2): exp(att - segmax[dst]) and segment sums (denominator
# + un-normalized weighted messages), accumulated into node-level outputs.
# ---------------------------------------------------------------------------
def _edge_aggregate_kernel(att_ref, msg_ref, dst_ref, m_ref,
                           den_ref, agg_ref, *, n_heads, d_k):
    f32 = jnp.float32

    @pl.when(pl.program_id(0) == 0)
    def _init():
        den_ref[...] = jnp.zeros(den_ref.shape, f32)
        agg_ref[...] = jnp.zeros(agg_ref.shape, f32)

    att = att_ref[...]                    # (TE, H)
    msg = msg_ref[...]                    # (TE, D)
    dst = dst_ref[...]                    # (TE, 1)
    te = att.shape[0]
    n_pad = den_ref.shape[0]
    n_hid = msg.shape[1]
    oh = (dst == jax.lax.broadcasted_iota(jnp.int32, (te, n_pad), 1)).astype(f32)

    # gather per-destination max back onto edges: (TE,N) x (H,N) contract N
    m_e = jax.lax.dot_general(oh, m_ref[...], (((1,), (1,)), ((), ())),
                              preferred_element_type=f32)          # (TE, H)
    p = jnp.exp(att - m_e)                                          # (TE, H)

    # head-broadcast p to (TE, D) via one tiny MXU matmul (no VPU mask loop)
    expand = _head_expand(n_heads, n_hid, d_k)                      # (H, D)
    p_full = jnp.dot(p, expand, preferred_element_type=f32)         # (TE, D)
    weighted = msg * p_full

    # scatter-add by destination: contract the edge axis of the tile one-hot
    den_ref[...] += jax.lax.dot_general(oh, p, (((0,), (0,)), ((), ())),
                                        preferred_element_type=f32)       # (N, H)
    agg_ref[...] += jax.lax.dot_general(oh, weighted, (((0,), (0,)), ((), ())),
                                        preferred_element_type=f32)       # (N, D)


def _edge_aggregate(att, msg, dst_col, m, *, n_heads, d_k, n_pad, tile_e):
    e_pad, n_hid = msg.shape
    kern = functools.partial(_edge_aggregate_kernel, n_heads=n_heads, d_k=d_k)
    return pl.pallas_call(
        kern,
        out_shape=(jax.ShapeDtypeStruct((n_pad, n_heads), jnp.float32),
                   jax.ShapeDtypeStruct((n_pad, n_hid), jnp.float32)),
        grid=(e_pad // tile_e,),
        in_specs=[pl.BlockSpec((tile_e, n_heads), lambda i: (i, 0)),
                  pl.BlockSpec((tile_e, n_hid), lambda i: (i, 0)),
                  pl.BlockSpec((tile_e, 1), lambda i: (i, 0)),
                  pl.BlockSpec((n_heads, n_pad), lambda i: (0, 0))],
        out_specs=(pl.BlockSpec((n_pad, n_heads), lambda i: (0, 0)),
                   pl.BlockSpec((n_pad, n_hid), lambda i: (0, 0))),
        compiler_params=pltpu.CompilerParams(
            dimension_semantics=("arbitrary",),
            vmem_limit_bytes=_VMEM_LIMIT),
    )(att, msg, dst_col, m)


# ---------------------------------------------------------------------------
# Kernel 4: normalize + GELU + target-specific update with learnable skip
# ---------------------------------------------------------------------------
def _node_update_kernel(agg_ref, den_ref, x_ref, t_ref, wa_ref, ba_ref,
                        alpha_ref, o_ref, *, num_types, n_heads, d_k, n_hid):
    f32 = jnp.float32
    den = den_ref[...]                                       # (TN, H)
    inv = pl.reciprocal(jnp.where(den > 0.0, den, 1.0), approx=True)
    expand = _head_expand(n_heads, n_hid, d_k)               # (H, D)
    inv_full = jnp.dot(inv, expand, preferred_element_type=f32)   # (TN, D)
    aggr = agg_ref[...] * inv_full                           # softmax-normalized sum
    # exact (erf) GELU, matching torch.nn.functional.gelu default
    aggr = 0.5 * aggr * (1.0 + jax.lax.erf(aggr * 0.7071067811865476))

    x = x_ref[...]
    tcol = t_ref[...]
    aggr_b = aggr.astype(jnp.bfloat16)
    out = jnp.zeros(o_ref.shape, f32)
    for t in range(num_types):
        wa_t = wa_ref[t * n_hid:(t + 1) * n_hid, :]
        ba_t = ba_ref[t:t + 1, :]
        trans = jnp.dot(aggr_b, wa_t, preferred_element_type=f32) + ba_t
        alpha = alpha_ref[0:1, t:t + 1]                      # (1, 1)
        mask = (tcol == t).astype(f32)
        out = out + mask * (alpha * trans + (1.0 - alpha) * x)
    o_ref[...] = out
    # TODO(synk): use_norm=False so the LayerNorm branch is unused; dropout on
    #             trans is identity (eval mode). For production n_hid < 128,
    #             pad the hidden dim to 128 for lane-dense stores.


def _node_update(agg, den, x, ntype, wa2, ba, alpha, *,
                 num_types, n_heads, d_k, tile_n):
    n_pad, n_hid = x.shape
    kern = functools.partial(_node_update_kernel, num_types=num_types,
                             n_heads=n_heads, d_k=d_k, n_hid=n_hid)
    return pl.pallas_call(
        kern,
        out_shape=jax.ShapeDtypeStruct((n_pad, n_hid), jnp.float32),
        grid=(n_pad // tile_n,),
        in_specs=[pl.BlockSpec((tile_n, n_hid), lambda i: (i, 0)),
                  pl.BlockSpec((tile_n, n_heads), lambda i: (i, 0)),
                  pl.BlockSpec((tile_n, n_hid), lambda i: (i, 0)),
                  pl.BlockSpec((tile_n, 1), lambda i: (i, 0)),
                  pl.BlockSpec(wa2.shape, lambda i: (0, 0)),
                  pl.BlockSpec(ba.shape, lambda i: (0, 0)),
                  pl.BlockSpec(alpha.shape, lambda i: (0, 0))],
        out_specs=pl.BlockSpec((tile_n, n_hid), lambda i: (i, 0)),
        compiler_params=pltpu.CompilerParams(
            dimension_semantics=("parallel",),
            vmem_limit_bytes=_VMEM_LIMIT),
    )(agg, den, x, ntype, wa2, ba, alpha)


# ---------------------------------------------------------------------------
# Parameter init (deterministic, mimics torch Linear / glorot inits)
# ---------------------------------------------------------------------------
def _linear_init(key, in_dim, out_dim):
    kw, kb = jax.random.split(key)
    bound = 1.0 / math.sqrt(in_dim)
    w = jax.random.uniform(kw, (in_dim, out_dim), jnp.float32, -bound, bound)
    b = jax.random.uniform(kb, (out_dim,), jnp.float32, -bound, bound)
    return w, b


def _stacked_linears(key, num, in_dim, out_dim):
    keys = jax.random.split(key, num)
    ws, bs = [], []
    for k in keys:
        w, b = _linear_init(k, in_dim, out_dim)
        ws.append(w)
        bs.append(b)
    return jnp.stack(ws), jnp.stack(bs)


def init_hgt_params(key, in_dim, n_hid, num_types, num_relations, n_heads, n_layers):
    d_k = n_hid // n_heads
    keys = jax.random.split(key, 1 + n_layers)
    aw, ab = _stacked_linears(keys[0], num_types, in_dim, n_hid)
    params = dict(
        adapt_w=aw.reshape(num_types * in_dim, n_hid).astype(jnp.bfloat16),
        adapt_b=ab,                                           # (T, n_hid) f32
        layers=[])
    for li in range(n_layers):
        lk = jax.random.split(keys[1 + li], 6)
        wk, bk = _stacked_linears(lk[0], num_types, n_hid, n_hid)
        wq, bq = _stacked_linears(lk[1], num_types, n_hid, n_hid)
        wv, bv = _stacked_linears(lk[2], num_types, n_hid, n_hid)
        wa, ba = _stacked_linears(lk[3], num_types, n_hid, n_hid)
        w_kqv = jnp.concatenate([wk, wq, wv], axis=2)         # (T, D, 3D) fused
        b_kqv = jnp.concatenate([bk, bq, bv], axis=1)         # (T, 3D)
        gb = math.sqrt(6.0 / (d_k + d_k))                     # glorot on last two dims
        rel_att = jax.random.uniform(lk[4], (num_relations, n_heads, d_k, d_k),
                                     jnp.float32, -gb, gb)
        rel_msg = jax.random.uniform(lk[5], (num_relations, n_heads, d_k, d_k),
                                     jnp.float32, -gb, gb)
        rel_pri = jnp.ones((num_relations, n_heads), jnp.float32)
        skip = jnp.ones((num_types,), jnp.float32)
        params['layers'].append(dict(
            w_kqv=w_kqv.reshape(num_types * n_hid, 3 * n_hid).astype(jnp.bfloat16),
            b_kqv=b_kqv,
            wa=wa.reshape(num_types * n_hid, n_hid).astype(jnp.bfloat16),
            ba=ba,
            rel_att=rel_att.reshape(num_relations * n_heads * d_k, d_k),
            rel_msg=rel_msg.reshape(num_relations * n_heads * d_k, d_k),
            pri_scaled=rel_pri / math.sqrt(d_k),              # pre-scaled by 1/sqrt(d_k)
            alpha=jax.nn.sigmoid(skip).reshape(1, num_types), # precomputed sigmoid(skip)
        ))
    return params


# ---------------------------------------------------------------------------
# Full HGT forward
# ---------------------------------------------------------------------------
def hgt_forward(params, node_feature, node_type, edge_index, edge_type, *,
                num_types, num_relations, n_heads, n_hid,
                tile_n=256, tile_e=256):
    d_k = n_hid // n_heads
    N = node_feature.shape[0]
    E = edge_index.shape[1]

    # pad nodes (always >= 1 dummy node so padded edges never touch real nodes)
    n_pad = _round_up(N + 1, tile_n)
    e_pad = _round_up(max(E, 1), tile_e)
    dummy = N

    x0 = jnp.zeros((n_pad, node_feature.shape[1]), jnp.float32).at[:N].set(
        node_feature.astype(jnp.float32))
    ntype = jnp.full((n_pad, 1), num_types, jnp.int32).at[:N, 0].set(
        node_type.astype(jnp.int32))
    src = jnp.full((e_pad,), dummy, jnp.int32).at[:E].set(edge_index[0].astype(jnp.int32))
    dst = jnp.full((e_pad,), dummy, jnp.int32).at[:E].set(edge_index[1].astype(jnp.int32))
    etype = jnp.full((e_pad, 1), num_relations, jnp.int32).at[:E, 0].set(
        edge_type.astype(jnp.int32))
    dst_col = dst[:, None]

    # typed adapt layer: tanh(x @ W[type] + b[type])
    x = _typed_linear(x0, ntype, params['adapt_w'], params['adapt_b'],
                      num_types=num_types, apply_tanh=True, tile_n=tile_n)

    for lp in params['layers']:
        # fused typed K/Q/V projection
        kqv = _typed_linear(x, ntype, lp['w_kqv'], lp['b_kqv'],
                            num_types=num_types, apply_tanh=False, tile_n=tile_n)
        k = kqv[:, :n_hid]
        q = kqv[:, n_hid:2 * n_hid]
        v = kqv[:, 2 * n_hid:]
        # index-based per-edge gather (XLA gather, O(E*D) bytes, no (E,N) one-hots)
        kj = jnp.take(k, src, axis=0)
        qi = jnp.take(q, dst, axis=0)
        vj = jnp.take(v, src, axis=0)

        att, msg, m = _edge_scores(kj, qi, vj, etype, dst_col,
                                   lp['rel_att'], lp['rel_msg'], lp['pri_scaled'],
                                   num_relations=num_relations, n_heads=n_heads,
                                   d_k=d_k, n_pad=n_pad, tile_e=tile_e)
        den, agg = _edge_aggregate(att, msg, dst_col, m,
                                   n_heads=n_heads, d_k=d_k,
                                   n_pad=n_pad, tile_e=tile_e)
        x = _node_update(agg, den, x, ntype, lp['wa'], lp['ba'], lp['alpha'],
                         num_types=num_types, n_heads=n_heads, d_k=d_k,
                         tile_n=tile_n)
    return x[:N]


if __name__ == "__main__":
    in_dim, n_hid = 16, 32
    num_types, num_relations, n_heads, n_layers = 3, 2, 4, 2
    N, E = 12, 24

    key = jax.random.PRNGKey(0)
    kp, kf, kt, ke, kr = jax.random.split(key, 5)
    params = init_hgt_params(kp, in_dim, n_hid, num_types, num_relations,
                             n_heads, n_layers)
    node_feature = jax.random.normal(kf, (N, in_dim), jnp.float32)
    node_type = jax.random.randint(kt, (N,), 0, num_types)
    edge_index = jax.random.randint(ke, (2, E), 0, N)
    edge_type = jax.random.randint(kr, (E,), 0, num_relations)

    # small tiles so the grids are actually multi-step at toy size
    out = hgt_forward(params, node_feature, node_type, edge_index, edge_type,
                      num_types=num_types, num_relations=num_relations,
                      n_heads=n_heads, n_hid=n_hid, tile_n=8, tile_e=8)
    out = jax.block_until_ready(out)
    assert out.shape == (N, n_hid)
    assert bool(jnp.all(jnp.isfinite(out)))
    print("KERNEL_OK")
</pallas_src>

<mosaic_0001>
module attributes {stable_mosaic.version = 11 : i64} {
  func.func @_typed_linear_kernel(%arg0: i32, %arg1: memref<8x16xf32, #tpu.memory_space<vmem>>, %arg2: memref<8x1xi32, #tpu.memory_space<vmem>>, %arg3: memref<48x32xbf16, #tpu.memory_space<vmem>>, %arg4: memref<3x32xf32, #tpu.memory_space<vmem>>, %arg5: memref<8x32xf32, #tpu.memory_space<vmem>>) attributes {dimension_semantics = [#tpu.dimension_semantics<parallel>], iteration_bounds = array<i64: 2>, scalar_prefetch = 0 : i64, scratch_operands = 0 : i64, tpu.core_type = #tpu.core_type<tc>, window_params = [{transform_indices = @transform_0, window_bounds = array<i64: 8, 16>}, {transform_indices = @transform_1, window_bounds = array<i64: 8, 1>}, {pipeline_mode = #tpu.pipeline_mode<synchronous>, transform_indices = @transform_2, window_bounds = array<i64: 48, 32>}, {pipeline_mode = #tpu.pipeline_mode<synchronous>, transform_indices = @transform_3, window_bounds = array<i64: 3, 32>}, {transform_indices = @transform_4, window_bounds = array<i64: 8, 32>}]} {
    %c0 = arith.constant 0 : index
    %c0_0 = arith.constant 0 : index
    %0 = vector.load %arg1[%c0, %c0_0] : memref<8x16xf32, #tpu.memory_space<vmem>>, vector<8x16xf32>
    %1 = arith.truncf %0 : vector<8x16xf32> to vector<8x16xbf16>
    %c0_1 = arith.constant 0 : index
    %c0_2 = arith.constant 0 : index
    %2 = vector.load %arg2[%c0_1, %c0_2] : memref<8x1xi32, #tpu.memory_space<vmem>>, vector<8x1xi32>
    %cst = arith.constant 0.000000e+00 : f32
    %3 = vector.broadcast %cst : f32 to vector<8x32xf32>
    %c0_3 = arith.constant 0 : index
    %c0_4 = arith.constant 0 : index
    %4 = vector.load %arg3[%c0_3, %c0_4] : memref<48x32xbf16, #tpu.memory_space<vmem>>, vector<16x32xbf16>
    %c0_5 = arith.constant 0 : index
    %c0_6 = arith.constant 0 : index
    %5 = vector.load %arg4[%c0_5, %c0_6] : memref<3x32xf32, #tpu.memory_space<vmem>>, vector<1x32xf32>
    %cst_7 = arith.constant dense<0.000000e+00> : vector<8x32xf32>
    %6 = tpu.matmul %1, %4, %cst_7 {dimension_numbers = #tpu.dot_dimension_numbers<[1], [0], [0], [1], [0, 0, 1, 1], [], []>} : vector<8x16xbf16>, vector<16x32xbf16>, vector<8x32xf32> -> vector<8x32xf32>
    %7 = vector.broadcast %5 : vector<1x32xf32> to vector<8x32xf32>
    %8 = arith.addf %6, %7 : vector<8x32xf32>
    %c0_i32 = arith.constant 0 : i32
    %9 = vector.broadcast %c0_i32 : i32 to vector<8x1xi32>
    %10 = arith.cmpi eq, %2, %9 : vector<8x1xi32>
    %11 = arith.extui %10 : vector<8x1xi1> to vector<8x1xi32>
    %12 = arith.sitofp %11 : vector<8x1xi32> to vector<8x1xf32>
    %13 = vector.broadcast %12 : vector<8x1xf32> to vector<8x32xf32>
    %14 = arith.mulf %13, %8 : vector<8x32xf32>
    %15 = arith.addf %3, %14 : vector<8x32xf32>
    %c16 = arith.constant 16 : index
    %c0_8 = arith.constant 0 : index
    %16 = vector.load %arg3[%c16, %c0_8] : memref<48x32xbf16, #tpu.memory_space<vmem>>, vector<16x32xbf16>
    %c1 = arith.constant 1 : index
    %c0_9 = arith.constant 0 : index
    %17 = vector.load %arg4[%c1, %c0_9] : memref<3x32xf32, #tpu.memory_space<vmem>>, vector<1x32xf32>
    %cst_10 = arith.constant dense<0.000000e+00> : vector<8x32xf32>
    %18 = tpu.matmul %1, %16, %cst_10 {dimension_numbers = #tpu.dot_dimension_numbers<[1], [0], [0], [1], [0, 0, 1, 1], [], []>} : vector<8x16xbf16>, vector<16x32xbf16>, vector<8x32xf32> -> vector<8x32xf32>
    %19 = vector.broadcast %17 : vector<1x32xf32> to vector<8x32xf32>
    %20 = arith.addf %18, %19 : vector<8x32xf32>
    %c1_i32 = arith.constant 1 : i32
    %21 = vector.broadcast %c1_i32 : i32 to vector<8x1xi32>
    %22 = arith.cmpi eq, %2, %21 : vector<8x1xi32>
    %23 = arith.extui %22 : vector<8x1xi1> to vector<8x1xi32>
    %24 = arith.sitofp %23 : vector<8x1xi32> to vector<8x1xf32>
    %25 = vector.broadcast %24 : vector<8x1xf32> to vector<8x32xf32>
    %26 = arith.mulf %25, %20 : vector<8x32xf32>
    %27 = arith.addf %15, %26 : vector<8x32xf32>
    %c32 = arith.constant 32 : index
    %c0_11 = arith.constant 0 : index
    %28 = vector.load %arg3[%c32, %c0_11] : memref<48x32xbf16, #tpu.memory_space<vmem>>, vector<16x32xbf16>
    %c2 = arith.constant 2 : index
    %c0_12 = arith.constant 0 : index
    %29 = vector.load %arg4[%c2, %c0_12] : memref<3x32xf32, #tpu.memory_space<vmem>>, vector<1x32xf32>
    %cst_13 = arith.constant dense<0.000000e+00> : vector<8x32xf32>
    %30 = tpu.matmul %1, %28, %cst_13 {dimension_numbers = #tpu.dot_dimension_numbers<[1], [0], [0], [1], [0, 0, 1, 1], [], []>} : vector<8x16xbf16>, vector<16x32xbf16>, vector<8x32xf32> -> vector<8x32xf32>
    %31 = vector.broadcast %29 : vector<1x32xf32> to vector<8x32xf32>
    %32 = arith.addf %30, %31 : vector<8x32xf32>
    %c2_i32 = arith.constant 2 : i32
    %33 = vector.broadcast %c2_i32 : i32 to vector<8x1xi32>
    %34 = arith.cmpi eq, %2, %33 : vector<8x1xi32>
    %35 = arith.extui %34 : vector<8x1xi1> to vector<8x1xi32>
    %36 = arith.sitofp %35 : vector<8x1xi32> to vector<8x1xf32>
    %37 = vector.broadcast %36 : vector<8x1xf32> to vector<8x32xf32>
    %38 = arith.mulf %37, %32 : vector<8x32xf32>
    %39 = arith.addf %27, %38 : vector<8x32xf32>
    %40 = math.tanh %39 : vector<8x32xf32>
    %c0_14 = arith.constant 0 : index
    %c0_15 = arith.constant 0 : index
    %41 = vector.load %arg5[%c0_14, %c0_15] : memref<8x32xf32, #tpu.memory_space<vmem>>, vector<8x32xf32>
    tpu.vector_store %arg5[%c0_14, %c0_15], %40 {strides = array<i32>} : memref<8x32xf32, #tpu.memory_space<vmem>>, vector<8x32xf32>,
    return
  }
  func.func @transform_0(%arg0: i32) -> (i32, i32) {
    %c0_i32 = arith.constant 0 : i32
    %c0_i32_0 = arith.constant 0 : i32
    return %arg0, %c0_i32 : i32, i32
  }
  func.func @transform_1(%arg0: i32) -> (i32, i32) {
    %c0_i32 = arith.constant 0 : i32
    %c0_i32_0 = arith.constant 0 : i32
    return %arg0, %c0_i32 : i32, i32
  }
  func.func @transform_2(%arg0: i32) -> (i32, i32) {
    %c0_i32 = arith.constant 0 : i32
    %c0_i32_0 = arith.constant 0 : i32
    %c0_i32_1 = arith.constant 0 : i32
    return %c0_i32, %c0_i32_0 : i32, i32
  }
  func.func @transform_3(%arg0: i32) -> (i32, i32) {
    %c0_i32 = arith.constant 0 : i32
    %c0_i32_0 = arith.constant 0 : i32
    %c0_i32_1 = arith.constant 0 : i32
    return %c0_i32, %c0_i32_0 : i32, i32
  }
  func.func @transform_4(%arg0: i32) -> (i32, i32) {
    %c0_i32 = arith.constant 0 : i32
    %c0_i32_0 = arith.constant 0 : i32
    return %arg0, %c0_i32 : i32, i32
  }
}

</mosaic_0001>

<bundles_post_ra>
// kernel: tpu_custom_call.1
= control target key start
LH: loop header
LB: loop body
LE: loop exit
PB: predicated region body
PF: predicated region fallthrough
CT: control target
= control target key end

     0   :  { %9 = vsyncpa [#allocation3], 0  ;;  %s806_s0 = inlined_call_operand.vmem [shape: f32[16,16], index: 0, kind: input, shape index: {}]   ;;  %s807_s1 = inlined_call_operand.vmem [shape: s32[16,1], index: 1, kind: input, shape index: {}]   ;;  %s808_s2 = inlined_call_operand.vmem [shape: bf16[48,32], index: 2, kind: input, shape index: {}]   ;;  %s809_s3 = inlined_call_operand.vmem [shape: f32[3,32], index: 3, kind: input, shape index: {}]   ;;  %s810_s4 = inlined_call_operand.hbm [shape: f32[16,32], index: 4, kind: output, shape index: {}]  }
   0x1   :  { %11 = vsyncpa [#allocation3 + $0x1], 0  ;;  %s686_s15 = smov 0   ;;  %s688_s16 = smov 0  }
   0x2   :  { %s690_s17 = smov 0   ;;  %s692_s18 = smov 0  }
   0x3 LB: > { %s707_s19 = sadd.s32 4294967295, %s655_s18   ;;  %s495_s20 = sadd.s32 4294967294, %s655_s18   ;;  %s655_s18 = sphi %s692_s18, %s816_s18   ;;  %s651_s17 = sphi %s690_s17, %s815_s17   ;;  %s647_s16 = sphi %s688_s16, %s814_s16   ;;  %s643_s15 = sphi %s686_s15, %s813_s15  }
   0x4   : > { %s711_s21 = sadd.s32 1, %s655_s18   ;;  %s118_s22 = sadd.s32 1, %s651_s17 }
   0x5   : > { %s115_s23 = ssub.s32 %s655_s18, %s711_s21  ;;  %p128_p0 = scmp.ne.s32.totalorder %s651_s17, %s647_s16 }
   0x6   : > { %p116_p1 = scmp.eq.s32.totalorder %s115_s23, 0  ;;  %p129_p2 = scmp.eq.s32.totalorder %s707_s19, 1 }
   0x7   : > { %p134_p3 = scmp.ne.s32.totalorder %s647_s16, %s643_s15  ;;  %p135_p4 = scmp.eq.s32.totalorder %s495_s20, 1 }
   0x8   : > { %s722_s24 = scalar_select %p116_p1, %s651_s17, %s118_s22  }
   0x9   : > { %p724_p5 = por %p129_p2, %p128_p0  ;;  %p728_p6 = por %p135_p4, %p134_p3 }
   0xa   : > { %p498_p7 = scmp.ge.s32.totalorder %s655_s18, 1  ;;  %p173_p8 = scmp.lt.s32.totalorder %s655_s18, 3 }
   0xc   : > { %p174_p9 = pnand %p498_p7, %p173_p8 }
   0xd   : > { %p202_p10 = scmp.lt.s32.totalorder (!%p174_p9), %s707_s19, 1  ;;  %s199_s30 = sand.u32 (!%p174_p9), 1, %s647_s16  }
   0xe   : > { %177 = sbr.rel (%p174_p9) target bundleno = 260 (0x104), region = 36  ;;  %s660_s14 = smov (!%p174_p9), [#allocation2]  }
   0xf   : > { %s599_s20 = sshll.u32 (!%p174_p9), %s660_s14, 4  ;;  %s600_s20 = int_to_ptr.vmem [resolvable:$false] %s599_s20 }
  0x13   : > { %v590_v0 = vld [vmem:[%s808_s2] sm:$0xff]   ;;  %v657_v1 = vmov 0.0   ;;  %v591_v2 = vld [vmem:[%s808_s2 + $0x8] sm:$0xff]   ;;  %vm658_vm0 = vmmov 0   ;;  %s203_s5 = scalar_select %p202_p10, %s707_s19, 1  ;;  %v659_v3 = vmov 0  }
  0x14   : > { %524 = vmatprep.subr.bf16.mxu0 %v657_v1  ;;  %530 = vmatprep.subr.bf16.mxu1 %v657_v1  ;;  %vm227_vm1 = vcmask 130048   ;;  %v592_v5 = vld [vmem:[%s808_s2 + $0x10] sm:$0xff]   ;;  %v502_v13 = vld [vmem:[%s809_s3] ss:$0 sm:$0xff]  ;;  %v506_v15 = vld [vmem:[%s809_s3 + $0x1] ss:$0 sm:$0xff] }
  0x15   : > { %525 = vmatpush3.bf16.msra.mxu0 %v590_v0  ;;  %526 = vmatprep.mubr.msk.bf16.mxu0 %vm658_vm0, %v657_v1  ;;  %s500_s6 = sshll.u32 %s203_s5, 3  ;;  %v510_v27 = vld [vmem:[%s809_s3 + $0x2] ss:$0 sm:$0xff]  ;;  %s499_s5 = sshll.u32 %s199_s30, 3  ;;  %vm408_vm5 = vcmask 261120  }
  0x16   : > { %531 = vmatpush3.bf16.msra.mxu1 %v591_v2  ;;  %532 = vmatprep.mubr.msk.bf16.mxu1 %vm658_vm0, %v657_v1  ;;  %s205_s9 = scalar_lea.vmem %s806_s0, %s500_s6  ;;  %s209_s12 = scalar_lea.vmem %s807_s1, %s500_s6 }
  0x17   : > { %536 = vmatprep.subr.bf16.mxu0 %v657_v1  ;;  %584 = vset.pattern.permute.xlu0 %v659_v3  ;;  %v211_v4 = vld [vmem:[%s205_s9] sm:$0xff]  ;;  %s515_s6 = sshll.u32 %s707_s19, 7  ;;  %s201_s7 = scalar_lea.vmem [#allocation2], %s499_s5 }
  0x18   : > { %v213_v6 = vld [vmem:[%s209_s12] sm:$0xff]  ;;  %v212_v7 = vpack.c.bf16 %v211_v4, %v211_v4  ;;  %s424_s8 = sshll.u32 %s201_s7, 4  ;;  %s771_s11 = scalar_lea.hbm %s810_s4, %s515_s6  ;;  %s425_s8 = int_to_ptr.vmem [resolvable:$true] %s424_s8 }
  0x19   : > { %vm271_vm2 = vcmp.eq.s32.totalorder %v213_v6, 0  ;;  %vm334_vm3 = vcmp.eq.s32.totalorder %v213_v6, 1  ;;  %vm397_vm4 = vcmp.eq.s32.totalorder %v213_v6, 2  ;;  %s411_s12 = scalar_lea.sflag [#allocation3], %s199_s30  ;;  %s595_s13 = scalar_lea.vmem %s425_s8, 128 }
  0x1a   : > { %v505_v8 = vsel %vm271_vm2, 1.0, %v657_v1  ;;  %v509_v9 = vsel %vm334_vm3, 1.0, %v657_v1  ;;  %527 = vmatmul.mubr.msk.bf16.vlgmr.msra.gmra.mxu0 %vm227_vm1, %v212_v7  ;;  %533 = vmatmul.mubr.msk.bf16.vlgmr.msra.gmra.mxu1 %vm227_vm1, %v212_v7  ;;  %v513_v11 = vsel %vm397_vm4, 1.0, %v657_v1  ;;  %p596_p11 = scmp.ne.s32.totalorder %s425_s8, %s595_s13  ;;  %s601_s19 = scalar_lea.vmem %s600_s20, 256 }
  0x1b   : > { %v585_v10 = vpack.i.bf16 %v509_v9, %v505_v8  ;;  %537 = vmatpush3.bf16.msra.mxu0 %v592_v5  ;;  %538 = vmatprep.mubr.msk.bf16.mxu0 %vm658_vm0, %v657_v1  ;;  %p602_p0 = scmp.lt.s32.totalorder %s425_s8, %s600_s20  ;;  %p603_p1 = scmp.lt.s32.totalorder %s601_s19, %s595_s13 }
  0x1c   : > { %p597_p12 = pnand %p596_p11, %p724_p5 }
  0x1d   : > { %586 = vperm.xlu0 %584, %v585_v10   ;;  %p604_p2 = por %p603_p1, %p602_p0 }
  0x1e   : > { %p598_p13 = pneg %p597_p12 }
  0x20   : > { %p605_p3 = pnand %p604_p2, %p598_p13 }
  0x21   : > { %402 = vperm.xlu0 %584, %v513_v11  }
  0x22   : > { %539 = vmatmul.mubr.msk.bf16.vlgmr.msra.gmra.mxu0 %vm227_vm1, %v212_v7 }
  0x98   : > { %v587_v12 = vpop.permute.xlu0 %586 }
  0x99   : > { %v589_v19 = vunpack.i.h.bf16 %v587_v12  ;;  %v588_v20 = vunpack.i.l.bf16 %v587_v12 }
  0x9c   : > { %v403_v32 = vpop.permute.xlu0 %402 }
  0xda   : > { %v265_v14 = vpop.f32.mrf.mxu0  ;;  %v328_v16 = vpop.f32.mrf.mxu1 }
  0xdb   : > { %v266_v21 = vadd.f32 %v502_v13, %v265_v14  ;;  %v329_v22 = vadd.f32 %v506_v15, %v328_v16 }
  0xdc   : > { %v528_v17 = vpop.f32.mrf.mxu0  ;;  %v534_v18 = vpop.f32.mrf.mxu1 }
  0xdd   : > { %v279_v28 = vmul.f32 %v588_v20, %v266_v21  ;;  %v342_v29 = vmul.f32 %v589_v19, %v329_v22 }
  0xde   : > { %v268_v23 = vpop.f32.mrf.mxu0  ;;  %v331_v24 = vpop.f32.mrf.mxu1 }
  0xdf   : > { %v343_v34 = vadd.f32 %v342_v29, %v279_v28 }
  0xe0   : > { %v529_v25 = vpop.f32.mrf.mxu0  ;;  %v535_v26 = vpop.f32.mrf.mxu1 }
  0xe2   : > { %v391_v30 = vpop.f32.mrf.mxu0 }
  0xe3   : > { %v392_v31 = vadd.f32 %v510_v27, %v391_v30 }
  0xe4   : > { %v540_v33 = vpop.f32.mrf.mxu0 }
  0xe5   : > { %v405_v35 = vmul.f32 %v403_v32, %v392_v31 }
  0xe6   : > { %v394_v36 = vpop.f32.mrf.mxu0 }
  0xe7   : > { %v406_v37 = vadd.f32 %v405_v35, %v343_v34 }
  0xe8   : > { %v541_v38 = vpop.f32.mrf.mxu0 }
  0xe9   : > { %593 = vtanh.f32 %v406_v37 }
  0xf6   : > { %v594_v39 = vpop.eup %593 }
  0xf7   : > { %409 = vst.msk [vmem:[%s201_s7] sm:$0xff] %vm408_vm5, %v594_v39 }
  0xf8   : > { %608 = shalt.err (!%p605_p3)
}
  0xf9   : > { %s609_s22 = scalar_lea.hbm %s771_s11, 128  ;;  %s613_s28 = scalar_lea.hbm %s810_s4, 256 }
  0xfa   : > { %p610_p4 = scmp.ne.s32.totalorder %s771_s11, %s609_s22  ;;  %p614_p9 = scmp.lt.s32.totalorder %s771_s11, %s810_s4 }
  0xfb   : > { %p615_p10 = scmp.lt.s32.totalorder %s613_s28, %s609_s22 }
  0xfc   : > { %p611_p7 = pnand %p610_p4, %p724_p5 }
  0xfd   : > { %p616_p11 = por %p615_p10, %p614_p9 }
  0xfe   : > { %p612_p8 = pneg %p611_p7 }
 0x100   : > { %p617_p12 = pnand %p616_p11, %p612_p8 }
 0x102   : > { %620 = shalt.err (!%p617_p12)
}
 0x103   : > { %542 = dma.vmem_to_hbm [thread:$0]  (%p724_p5), %s425_s8, 128, %s771_s11, %s411_s12  }
 0x104 PF: > { %p548_p13 = scmp.ge.s32.totalorder %s655_s18, 2  ;;  %s436_s5 = sand.u32 1, %s643_s15  }
 0x105   : > { %s437_s6 = scalar_lea.sflag [#allocation3], %s436_s5 }
 0x106   : > { %p545_p0 = pnand %p548_p13, %p728_p6 }
 0x108   : > { %p546_p1 = pneg %p545_p0 }
 0x10a   : > { %638 = dma.done.wait (%p546_p1), %s437_s6, 128  }
 0x10b   : > { %640 = vsyncadd (%p546_p1), %s437_s6, 4294967168  ;;  %p14_p2 = scmp.ge.s32.totalorder %s711_s21, 4   ;;  %s813_s15 = smov %s647_s16 }
 0x10c   : > { %s814_s16 = smov %s651_s17  ;;  %s815_s17 = smov %s722_s24 }
 0x10d   : > { %s816_s18 = smov %s711_s21  ;;  %16 = sbr.rel (!%p14_p2) target bundleno = 3 (0x3), region = 74 }
 0x112   :  { %442 = vsyncpa [#allocation3], 1 }
 0x113   :  { %444 = vsyncpa [#allocation3 + $0x1], 1 }

</bundles_post_ra>
